<compile_context>
chip_gen: v7x
topology: tpu7x:2x2x1
jax: 0.10.0
libtpu: 0.0.40
codegen_flags: <defaults>
</compile_context>

<pallas_src>
import functools

import jax
import jax.numpy as jnp
from jax.experimental import pallas as pl
from jax.experimental.pallas import tpu as pltpu


def _kd_loss_kernel(s_ref, t_ref, tgt_ref, out_ref, *, T, l):
    # s_ref, t_ref : (B, C) f32 VMEM   (student / teacher logits)
    # tgt_ref      : (B, 1) i32 VMEM   (class labels)
    # out_ref      : (1, 3) f32 SMEM   -> [hard_loss, soft_loss, loss]
    s = s_ref[...]
    t = t_ref[...]
    B, C = s.shape
    inv_b = 1.0 / B
    inv_T = 1.0 / T

    # ---------------- hard loss: mean_b CE(s_logits, target) ----------------
    m_s = jnp.max(s, axis=-1, keepdims=True)                      # (B, 1)
    lse_s = m_s + jnp.log(jnp.sum(jnp.exp(s - m_s), axis=-1, keepdims=True))
    lane = jax.lax.broadcasted_iota(jnp.int32, (B, C), 1)
    onehot = (lane == tgt_ref[...]).astype(jnp.float32)           # (B, C)
    s_tgt = jnp.sum(onehot * s, axis=-1, keepdims=True)           # (B, 1)
    hard = jnp.sum(lse_s - s_tgt) * inv_b

    # ------- soft loss: T^2 * KLDiv(log_softmax(s/T), softmax(t/T)) ---------
    sT = s * inv_T
    tT = t * inv_T
    m_sT = jnp.max(sT, axis=-1, keepdims=True)
    lse_sT = m_sT + jnp.log(jnp.sum(jnp.exp(sT - m_sT), axis=-1, keepdims=True))
    m_tT = jnp.max(tT, axis=-1, keepdims=True)
    lse_tT = m_tT + jnp.log(jnp.sum(jnp.exp(tT - m_tT), axis=-1, keepdims=True))

    log_p_s = sT - lse_sT                                         # (B, C)
    log_p_t = tT - lse_tT                                         # (B, C)
    p_t = jnp.exp(log_p_t)

    contrib = p_t * (log_p_t - log_p_s)                           # (B, C)
    # Sum over batch rows first (VPU adds), then one cross-lane reduce (XLU).
    kl = jnp.sum(jnp.sum(contrib, axis=0, keepdims=True)) * inv_b  # batchmean
    soft = (T * T) * kl

    loss = l * hard + (1.0 - l) * soft
    out_ref[0, 0] = hard
    out_ref[0, 1] = soft
    out_ref[0, 2] = loss


@functools.partial(jax.jit, static_argnames=("T", "l"))
def _kd_loss_call(s_logits, t_logits, targets, *, T, l):
    s = s_logits.astype(jnp.float32)
    t = t_logits.astype(jnp.float32)
    B, C = s.shape
    tgt = targets.astype(jnp.int32).reshape(B, 1)

    kernel = functools.partial(_kd_loss_kernel, T=float(T), l=float(l))
    return pl.pallas_call(
        kernel,
        out_shape=jax.ShapeDtypeStruct((1, 3), jnp.float32),
        grid=(),
        in_specs=[
            pl.BlockSpec((B, C), lambda: (0, 0)),
            pl.BlockSpec((B, C), lambda: (0, 0)),
            pl.BlockSpec((B, 1), lambda: (0, 0)),
        ],
        out_specs=pl.BlockSpec(memory_space=pltpu.MemorySpace.SMEM),
        cost_estimate=pl.CostEstimate(
            flops=14 * B * C,
            transcendentals=4 * B * C,
            bytes_accessed=8 * B * C + 4 * B + 12,
        ),
    )(s, t, tgt)


class KDLossPallas:
    """JAX/Pallas port of KD_Loss with the canonical Hinton criteria.

    hard_criteria -> cross-entropy(s_logits, targets)
    soft_criteria -> KLDiv(log_softmax(s/T), softmax(t/T), reduction='batchmean')
    forward(s_logits, t_logits, targets) -> l*hard + (1-l)*T^2*soft
    """
    # TODO(synk): arbitrary user-supplied soft/hard criteria callables cannot be
    # translated into a fixed Pallas kernel; the canonical KD pair is hard-coded.

    def __init__(self, l, T):
        self.l = float(l)
        self.T = float(T)

    def forward(self, s_logits, t_logits, targets, return_detail=False):
        out = _kd_loss_call(s_logits, t_logits, targets, T=self.T, l=self.l)
        hard, soft, loss = out[0, 0], out[0, 1], out[0, 2]
        if return_detail:
            return (hard, soft, loss)
        return loss

    __call__ = forward


if __name__ == "__main__":
    key = jax.random.PRNGKey(0)
    B, C = 8, 128          # lane-dense: class dim fills all 128 lanes
    T = 4.0
    l = 0.7

    k1, k2, k3 = jax.random.split(key, 3)
    s_logits = jax.random.normal(k1, (B, C), dtype=jnp.float32)
    t_logits = jax.random.normal(k2, (B, C), dtype=jnp.float32)
    targets = jax.random.randint(k3, (B,), 0, C, dtype=jnp.int32)

    kd = KDLossPallas(l=l, T=T)
    hard, soft, loss = kd(s_logits, t_logits, targets, return_detail=True)
    jax.block_until_ready(loss)

    # ---- pure-JAX reference (same math as the canonical PyTorch criteria) ----
    log_p_s = jax.nn.log_softmax(s_logits, axis=-1)
    hard_ref = -jnp.mean(jnp.take_along_axis(log_p_s, targets[:, None], axis=-1))
    log_p_sT = jax.nn.log_softmax(s_logits / T, axis=-1)
    p_tT = jax.nn.softmax(t_logits / T, axis=-1)
    kl_ref = jnp.sum(p_tT * (jnp.log(p_tT) - log_p_sT)) / B
    soft_ref = (T * T) * kl_ref
    loss_ref = l * hard_ref + (1.0 - l) * soft_ref

    assert jnp.allclose(hard, hard_ref, rtol=1e-5, atol=1e-5), (hard, hard_ref)
    assert jnp.allclose(soft, soft_ref, rtol=1e-5, atol=1e-5), (soft, soft_ref)
    assert jnp.allclose(loss, loss_ref, rtol=1e-5, atol=1e-5), (loss, loss_ref)

    print("KERNEL_OK")
</pallas_src>

<mosaic_0001>
module attributes {stable_mosaic.version = 11 : i64} {
  func.func @_kd_loss_kernel(%arg0: memref<8x128xf32, #tpu.memory_space<vmem>>, %arg1: memref<8x128xf32, #tpu.memory_space<vmem>>, %arg2: memref<8x1xi32, #tpu.memory_space<vmem>>, %arg3: memref<1x3xf32, #tpu.memory_space<smem>>) attributes {dimension_semantics = [], scalar_prefetch = 0 : i64, scratch_operands = 0 : i64, tpu.core_type = #tpu.core_type<tc>} {
    %c0 = arith.constant 0 : index
    %c0_0 = arith.constant 0 : index
    %0 = vector.load %arg0[%c0, %c0_0] : memref<8x128xf32, #tpu.memory_space<vmem>>, vector<8x128xf32>
    %c0_1 = arith.constant 0 : index
    %c0_2 = arith.constant 0 : index
    %1 = vector.load %arg1[%c0_1, %c0_2] : memref<8x128xf32, #tpu.memory_space<vmem>>, vector<8x128xf32>
    %cst = arith.constant dense<0xFF800000> : vector<8xf32>
    %2 = vector.multi_reduction <maximumf>, %0, %cst [1] : vector<8x128xf32> to vector<8xf32>
    %3 = vector.shape_cast %2 : vector<8xf32> to vector<8x1xf32>
    %4 = vector.broadcast %3 : vector<8x1xf32> to vector<8x128xf32>
    %5 = arith.subf %0, %4 : vector<8x128xf32>
    %6 = math.exp %5 : vector<8x128xf32>
    %cst_3 = arith.constant dense<0.000000e+00> : vector<8xf32>
    %7 = vector.multi_reduction <add>, %6, %cst_3 [1] : vector<8x128xf32> to vector<8xf32>
    %8 = vector.shape_cast %7 : vector<8xf32> to vector<8x1xf32>
    %9 = math.log %8 : vector<8x1xf32>
    %10 = arith.addf %3, %9 : vector<8x1xf32>
    %11 = tpu.iota {dimensions = array<i32: 1>} : vector<8x128xi32>
    %c0_4 = arith.constant 0 : index
    %c0_5 = arith.constant 0 : index
    %12 = vector.load %arg2[%c0_4, %c0_5] : memref<8x1xi32, #tpu.memory_space<vmem>>, vector<8x1xi32>
    %13 = vector.broadcast %12 : vector<8x1xi32> to vector<8x128xi32>
    %14 = arith.cmpi eq, %11, %13 : vector<8x128xi32>
    %15 = arith.extui %14 : vector<8x128xi1> to vector<8x128xi32>
    %16 = arith.sitofp %15 : vector<8x128xi32> to vector<8x128xf32>
    %17 = arith.mulf %16, %0 : vector<8x128xf32>
    %cst_6 = arith.constant dense<0.000000e+00> : vector<8xf32>
    %18 = vector.multi_reduction <add>, %17, %cst_6 [1] : vector<8x128xf32> to vector<8xf32>
    %19 = vector.shape_cast %18 : vector<8xf32> to vector<8x1xf32>
    %20 = arith.subf %10, %19 : vector<8x1xf32>
    %21 = vector.shape_cast %20 : vector<8x1xf32> to vector<1x8x1xf32>
    %cst_7 = arith.constant dense<0.000000e+00> : vector<1xf32>
    %22 = vector.multi_reduction <add>, %21, %cst_7 [1, 2] : vector<1x8x1xf32> to vector<1xf32>
    %23 = vector.shape_cast %22 : vector<1xf32> to vector<1x1x1xf32>
    %24 = vector.extract %23[0, 0, 0] : f32 from vector<1x1x1xf32>
    %cst_8 = arith.constant 1.250000e-01 : f32
    %25 = arith.mulf %24, %cst_8 : f32
    %cst_9 = arith.constant 2.500000e-01 : f32
    %26 = vector.broadcast %cst_9 : f32 to vector<8x128xf32>
    %27 = arith.mulf %0, %26 : vector<8x128xf32>
    %cst_10 = arith.constant 2.500000e-01 : f32
    %28 = vector.broadcast %cst_10 : f32 to vector<8x128xf32>
    %29 = arith.mulf %1, %28 : vector<8x128xf32>
    %cst_11 = arith.constant dense<0xFF800000> : vector<8xf32>
    %30 = vector.multi_reduction <maximumf>, %27, %cst_11 [1] : vector<8x128xf32> to vector<8xf32>
    %31 = vector.shape_cast %30 : vector<8xf32> to vector<8x1xf32>
    %32 = vector.broadcast %31 : vector<8x1xf32> to vector<8x128xf32>
    %33 = arith.subf %27, %32 : vector<8x128xf32>
    %34 = math.exp %33 : vector<8x128xf32>
    %cst_12 = arith.constant dense<0.000000e+00> : vector<8xf32>
    %35 = vector.multi_reduction <add>, %34, %cst_12 [1] : vector<8x128xf32> to vector<8xf32>
    %36 = vector.shape_cast %35 : vector<8xf32> to vector<8x1xf32>
    %37 = math.log %36 : vector<8x1xf32>
    %38 = arith.addf %31, %37 : vector<8x1xf32>
    %cst_13 = arith.constant dense<0xFF800000> : vector<8xf32>
    %39 = vector.multi_reduction <maximumf>, %29, %cst_13 [1] : vector<8x128xf32> to vector<8xf32>
    %40 = vector.shape_cast %39 : vector<8xf32> to vector<8x1xf32>
    %41 = vector.broadcast %40 : vector<8x1xf32> to vector<8x128xf32>
    %42 = arith.subf %29, %41 : vector<8x128xf32>
    %43 = math.exp %42 : vector<8x128xf32>
    %cst_14 = arith.constant dense<0.000000e+00> : vector<8xf32>
    %44 = vector.multi_reduction <add>, %43, %cst_14 [1] : vector<8x128xf32> to vector<8xf32>
    %45 = vector.shape_cast %44 : vector<8xf32> to vector<8x1xf32>
    %46 = math.log %45 : vector<8x1xf32>
    %47 = arith.addf %40, %46 : vector<8x1xf32>
    %48 = vector.broadcast %38 : vector<8x1xf32> to vector<8x128xf32>
    %49 = arith.subf %27, %48 : vector<8x128xf32>
    %50 = vector.broadcast %47 : vector<8x1xf32> to vector<8x128xf32>
    %51 = arith.subf %29, %50 : vector<8x128xf32>
    %52 = math.exp %51 : vector<8x128xf32>
    %53 = arith.subf %51, %49 : vector<8x128xf32>
    %54 = arith.mulf %52, %53 : vector<8x128xf32>
    %cst_15 = arith.constant dense<0.000000e+00> : vector<128xf32>
    %55 = vector.multi_reduction <add>, %54, %cst_15 [0] : vector<8x128xf32> to vector<128xf32>
    %56 = vector.shape_cast %55 : vector<128xf32> to vector<1x128xf32>
    %57 = vector.shape_cast %56 : vector<1x128xf32> to vector<1x1x128xf32>
    %cst_16 = arith.constant dense<0.000000e+00> : vector<1xf32>
    %58 = vector.multi_reduction <add>, %57, %cst_16 [1, 2] : vector<1x1x128xf32> to vector<1xf32>
    %59 = vector.shape_cast %58 : vector<1xf32> to vector<1x1x1xf32>
    %60 = vector.extract %59[0, 0, 0] : f32 from vector<1x1x1xf32>
    %cst_17 = arith.constant 1.250000e-01 : f32
    %61 = arith.mulf %60, %cst_17 : f32
    %cst_18 = arith.constant 1.600000e+01 : f32
    %62 = arith.mulf %cst_18, %61 : f32
    %cst_19 = arith.constant 0.699999988 : f32
    %63 = arith.mulf %cst_19, %25 : f32
    %cst_20 = arith.constant 3.000000e-01 : f32
    %64 = arith.mulf %cst_20, %62 : f32
    %65 = arith.addf %63, %64 : f32
    %c0_21 = arith.constant 0 : index
    %c0_22 = arith.constant 0 : index
    %66 = memref.load %arg3[%c0_21, %c0_22] : memref<1x3xf32, #tpu.memory_space<smem>>
    memref.store %25, %arg3[%c0_21, %c0_22] : memref<1x3xf32, #tpu.memory_space<smem>>
    %c0_23 = arith.constant 0 : index
    %c1 = arith.constant 1 : index
    %67 = memref.load %arg3[%c0_23, %c1] : memref<1x3xf32, #tpu.memory_space<smem>>
    memref.store %62, %arg3[%c0_23, %c1] : memref<1x3xf32, #tpu.memory_space<smem>>
    %c0_24 = arith.constant 0 : index
    %c2 = arith.constant 2 : index
    %68 = memref.load %arg3[%c0_24, %c2] : memref<1x3xf32, #tpu.memory_space<smem>>
    memref.store %65, %arg3[%c0_24, %c2] : memref<1x3xf32, #tpu.memory_space<smem>>
    return
  }
}

</mosaic_0001>

<bundles_post_ra>
// kernel: _kd_loss_call.1
= control target key start
LH: loop header
LB: loop body
LE: loop exit
PB: predicated region body
PF: predicated region fallthrough
CT: control target
= control target key end

     0   :  { %v157_v3 = vmov 0   ;;  %s201_s0 = inlined_call_operand.vmem [shape: f32[8,128], index: 0, kind: input, shape index: {}]   ;;  %s202_s1 = inlined_call_operand.vmem [shape: f32[8,128], index: 1, kind: input, shape index: {}]   ;;  %s203_s2 = inlined_call_operand.vmem [shape: s32[8,1], index: 2, kind: input, shape index: {}]   ;;  %s204_s3 = inlined_call_operand.hbm [shape: f32[1,3], index: 3, kind: output, shape index: {}]  }
   0x1   :  { %v16_v0 = vld [vmem:[%s202_s1] sm:$0xff]  ;;  %130 = vset.pattern.permute.xlu0 %v157_v3 }
   0x2   :  { %v15_v1 = vld [vmem:[%s201_s0] sm:$0xff]  ;;  %v53_v2 = vmul.f32 0.25, %v16_v0 }
   0x3   :  { %17 = vmax.xlane.f32.xlu1 %v15_v1 }
   0x4   :  { %8 = vsyncpa [#allocation3], 0  ;;  %129 = vset.pattern.permute.xlu1 %v157_v3  ;;  %64 = vmax.xlane.f32.xlu0 %v53_v2  ;;  %v52_v4 = vmul.f32 0.25, %v15_v1  ;;  %v29_v5 = vld [vmem:[%s203_s2] sm:$0xff]  ;;  %v27_v15 = vlaneseq  ;;  %v158_v21 = vmov 0.0   ;;  %vm40_vm1 = vcmask 7168  }
   0x5   :  { %vm86_vm2 = vcmask 1040384   ;;  %s145_s25 = scalar_lea.hbm %s204_s3, 16 }
   0x6   :  { %v28_v16 = vand.u32 127, %v27_v15  ;;  %p146_p0 = scmp.ne.s32.totalorder %s204_s3, %s145_s25  ;;  %p149_p1 = scmp.lt.u32.totalorder %s145_s25, %s204_s3 }
   0x8   :  { %54 = vmax.xlane.f32.xlu0 %v52_v4  ;;  %p151_p2 = pnand %p149_p1, %p146_p0 }
  0x14   :  { %31 = vperm.xlu1 %129, %v29_v5  }
  0x90   :  { %v18_v7 = vpop.xlane.xlu1 %17 }
  0x91   :  { %v65_v6 = vpop.xlane.xlu0 %64  ;;  %v19_v10 = vsub.f32 %v15_v1, %v18_v7 }
  0x92   :  { %v66_v8 = vsub.f32 %v53_v2, %v65_v6 }
  0x93   :  { %v20_v14 = vmul.f32 1.442695, %v19_v10 }
  0x94   :  { %v67_v9 = vmul.f32 1.442695, %v66_v8  ;;  %v32_v18 = vpop.permute.xlu1 %31 }
  0x95   :  { %v55_v11 = vpop.xlane.xlu0 %54  ;;  %vm33_vm0 = vcmp.eq.s32.totalorder %v28_v16, %v32_v18 }
  0x96   :  { %131 = vpow2.f32 %v67_v9  ;;  %v56_v12 = vsub.f32 %v52_v4, %v55_v11  ;;  %v121_v22 = vsel %vm33_vm0, 1.0, %v158_v21 }
  0x97   :  { %v36_v23 = vmul.f32 %v121_v22, %v15_v1 }
  0x98   :  { %v57_v13 = vmul.f32 1.442695, %v56_v12 }
  0x9a   :  { %133 = vpow2.f32 %v57_v13 }
  0x9b   :  { %135 = vpow2.f32 %v20_v14 }
  0xa0   :  { %v132_v17 = vpop.eup %131 }
  0xa1   :  { %69 = vadd.xlane.f32.xlu0 %v132_v17 }
  0xa4   :  { %v134_v19 = vpop.eup %133 }
  0xa5   :  { %59 = vadd.xlane.f32.xlu0 %v134_v19  ;;  %v136_v20 = vpop.eup %135 }
  0xa9   :  { %22 = vadd.xlane.f32.xlu0 %v136_v20 }
  0xad   :  { %37 = vadd.xlane.f32.xlu0 %v36_v23 }
 0x12e   :  { %v70_v24 = vpop.xlane.xlu0 %69 }
 0x12f   :  { %137 = vlog2.f32 %v70_v24 }
 0x132   :  { %v60_v25 = vpop.xlane.xlu0 %59 }
 0x133   :  { %139 = vlog2.f32 %v60_v25 }
 0x136   :  { %v23_v26 = vpop.xlane.xlu0 %22 }
 0x137   :  { %141 = vlog2.f32 %v23_v26 }
 0x139   :  { %v138_v27 = vpop.eup %137 }
 0x13a   :  { %v72_v28 = vmul.f32 0.6931472, %v138_v27  ;;  %v38_v37 = vpop.xlane.xlu0 %37 }
 0x13c   :  { %v73_v29 = vadd.f32 %v72_v28, %v65_v6 }
 0x13d   :  { %v140_v30 = vpop.eup %139 }
 0x13e   :  { %v75_v31 = vsub.f32 %v53_v2, %v73_v29  ;;  %v62_v32 = vmul.f32 0.6931472, %v140_v30 }
 0x140   :  { %v76_v33 = vmul.f32 1.442695, %v75_v31  ;;  %v63_v36 = vadd.f32 %v62_v32, %v55_v11 }
 0x141   :  { %v142_v34 = vpop.eup %141 }
 0x142   :  { %143 = vpow2.f32 %v76_v33  ;;  %v25_v35 = vmul.f32 0.6931472, %v142_v34  ;;  %v74_v40 = vsub.f32 %v52_v4, %v63_v36 }
 0x144   :  { %v26_v38 = vadd.f32 %v25_v35, %v18_v7  ;;  %v78_v42 = vsub.f32 %v75_v31, %v74_v40 }
 0x146   :  { %v39_v39 = vsub.f32 %v26_v38, %v38_v37 }
 0x148   :  { %v41_v41 = vsel %vm40_vm1, %v39_v39, 0.0 }
 0x149   :  { %42 = vadd.xlane.f32.xlu1 %v41_v41 }
 0x14c   :  { %v144_v43 = vpop.eup %143 }
 0x14d   :  { %v79_v44 = vmul.f32 %v144_v43, %v78_v42 }
 0x14f   :  { %v80_v45 = vrot.slane %v79_v44, 4 }
 0x151   :  { %v81_v46 = vadd.f32 %v80_v45, %v79_v44 }
 0x153   :  { %v82_v47 = vrot.slane %v81_v46, 2 }
 0x155   :  { %v83_v48 = vadd.f32 %v82_v47, %v81_v46 }
 0x157   :  { %v84_v49 = vrot.slane %v83_v48, 1 }
 0x159   :  { %v85_v50 = vadd.f32 %v84_v49, %v83_v48 }
 0x15b   :  { %v87_v51 = vsel %vm86_vm2, %v85_v50, 0.0 }
 0x15c   :  { %88 = vadd.xlane.f32.xlu0 %v87_v51 }
 0x1d6   :  { %v43_v52 = vpop.xlane.xlu1 %42 }
 0x1d7   :  { %v44_v53 = vrot.slane %v43_v52, 4 }
 0x1d9   :  { %v45_v54 = vadd.f32 %v44_v53, %v43_v52 }
 0x1db   :  { %v46_v55 = vrot.slane %v45_v54, 2 }
 0x1dd   :  { %v47_v56 = vadd.f32 %v46_v55, %v45_v54 }
 0x1df   :  { %v48_v57 = vrot.slane %v47_v56, 1 }
 0x1e1   :  { %v49_v58 = vadd.f32 %v48_v57, %v47_v56 }
 0x1e3   :  { %122 = vpush %v49_v58 }
 0x1e9   :  { %v89_v59 = vpop.xlane.xlu0 %88 }
 0x1ea   :  { %v90_v60 = vrot.slane %v89_v59, 4 }
 0x1ec   :  { %v91_v61 = vadd.f32 %v90_v60, %v89_v59 }
 0x1ee   :  { %v92_v62 = vrot.slane %v91_v61, 2 }
 0x1f0   :  { %v93_v63 = vadd.f32 %v92_v62, %v91_v61 }
 0x1f2   :  { %v94_v0 = vrot.slane %v93_v63, 1 }
 0x1f4   :  { %v95_v1 = vadd.f32 %v94_v0, %v93_v63 }
 0x1f6   :  { %124 = vpush %v95_v1 }
 0x214   :  { %s123_s0 = spop %122 }
 0x215   :  { %s51_s1 = smul.f32 0.125, %s123_s0 }
 0x217   :  { %103 = sst [smem:[#allocation2]] %s51_s1  ;;  %s99_s20 = smul.f32 0.7, %s51_s1 }
 0x227   :  { %s125_s2 = spop %124 }
 0x228   :  { %s97_s18 = smul.f32 0.125, %s125_s2 }
 0x22a   :  { %s98_s19 = smul.f32 16.0, %s97_s18 }
 0x22c   :  { %s100_s21 = smul.f32 0.3, %s98_s19  ;;  %105 = sst [smem:[#allocation2 + $0x1]] %s98_s19 }
 0x22e   :  { %s101_s22 = sadd.f32 %s100_s21, %s99_s20 }
 0x230   :  { %107 = sst [smem:[#allocation2 + $0x2]] %s101_s22 }
 0x231   :  { %154 = shalt.err (!%p151_p2)
}
 0x232   :  { %s159_s30 = smov [#allocation2]  }
 0x233   :  { %115 = dma.smem_to_hbm %s159_s30, 16, %s204_s3, [#allocation3]  }
 0x234   :  { %155 = dma.done.wait [#allocation3], 16  }
 0x235   :  { %156 = vsyncadd [#allocation3], 4294967280 }
 0x236   :  { %119 = sfence }
 0x237   :  { %120 = vsyncpa [#allocation3], 1 }

</bundles_post_ra>
